<compile_context>
chip_gen: v7x
topology: tpu7x:2x2x1
jax: 0.10.0
libtpu: 0.0.40
codegen_flags: <defaults>
</compile_context>

<pallas_src>
import functools

import jax
import jax.numpy as jnp
from jax.experimental import pallas as pl
from jax.experimental.pallas import tpu as pltpu


def _cmfp_kernel(x_ref, w_ref, o_ref, *, C, M, Hout):
    """Compute one (Hout, TILE) output tile.

    x_ref: (C, H, TILE) VMEM block (full C and H, lane-tiled).
    w_ref: (C * M,) f32 in SMEM (whole weight), read as scalars.
    o_ref: (Hout, TILE) VMEM block.
    """
    tile = o_ref.shape[-1]
    acc = jnp.zeros((Hout, tile), jnp.float32)
    # C and M are small compile-time constants -> static unroll.  Each tap is
    # a scalar-splat multiply-accumulate; only `acc` stays live (bounded vreg
    # pressure, VALU work stays far below the HBM roofline).
    for c in range(C):
        for m in range(M):
            acc = acc + (x_ref[c, m:m + Hout, :].astype(jnp.float32)
                         * w_ref[c * M + m])
    o_ref[...] = acc.astype(o_ref.dtype)


def _choose_lane_tile(L, per_lane_bytes, *, max_single_tile=1024,
                      budget_bytes=16 * 1024 * 1024):
    """Pick a lane-axis tile: full extent when small enough (one grid step),
    else the largest multiple of 128 whose double-buffered VMEM footprint fits
    a budget that is safe on v5e/v6e (128 MiB) and v7x (64 MiB).  Measured
    roofline saturation flattens around 512-1024 lanes, so larger tiles only
    trade pipelining overlap for nothing."""
    if L <= max_single_tile and L * per_lane_bytes <= budget_bytes:
        return L
    for cand in (1024, 512, 256):
        if cand < L and cand * per_lane_bytes <= budget_bytes:
            return cand
    return 128


def cmfp_forward(x, weight):
    """x: (N, C, H, W) NCHW; weight: (C, M) (out_channels=1 / kw=1 dims dropped).

    Returns the equivalent of torch.squeeze(Conv2d(C,1,(M,1),bias=False)(x))."""
    N, C, H, W = x.shape
    Cw, M = weight.shape
    assert Cw == C, f"weight channels {Cw} != input channels {C}"
    assert 1 <= M <= H, f"kernel height M={M} must satisfy 1 <= M <= H={H}"
    Hout = H - M + 1

    w_flat = weight.reshape(C * M).astype(jnp.float32)
    out_dtype = x.dtype
    x_bytes = jnp.dtype(x.dtype).itemsize
    o_bytes = jnp.dtype(out_dtype).itemsize
    # Per lane column: double-buffered x block + double-buffered out block +
    # the f32 accumulator.
    per_lane_bytes = 2 * C * H * x_bytes + 2 * Hout * o_bytes + 4 * Hout

    kernel = functools.partial(_cmfp_kernel, C=C, M=M, Hout=Hout)
    w_spec = pl.BlockSpec(memory_space=pltpu.MemorySpace.SMEM)

    if W >= 128:
        # Path A: W itself is lane-dense; tile it (no halo needed since the
        # conv kernel is 1-wide along W).  Grid over (batch, W tiles), both
        # parallel -> shardable across TensorCores.
        TW = _choose_lane_tile(W, per_lane_bytes)
        Wp = pl.cdiv(W, TW) * TW
        xw = x if Wp == W else jnp.pad(
            x, ((0, 0), (0, 0), (0, 0), (0, Wp - W)))
        out = pl.pallas_call(
            kernel,
            out_shape=jax.ShapeDtypeStruct((N, Hout, Wp), out_dtype),
            grid=(N, Wp // TW),
            in_specs=[
                pl.BlockSpec((None, C, H, TW), lambda n, t: (n, 0, 0, t)),
                w_spec,
            ],
            out_specs=pl.BlockSpec((None, Hout, TW), lambda n, t: (n, 0, t)),
            compiler_params=pltpu.CompilerParams(
                dimension_semantics=("parallel", "parallel"),
                vmem_limit_bytes=32 * 1024 * 1024),
        )(xw, w_flat)
        if Wp != W:
            out = out[:, :, :W]
    else:
        # Path B: small W (e.g. the shipped 16x16 case).  Fold batch into the
        # lane axis for denser DMAs/writebacks and collapse to (usually) one
        # grid step instead of one tiny step per batch element.
        L = N * W
        x2 = jnp.transpose(x, (1, 2, 0, 3)).reshape(C, H, L)
        TL = _choose_lane_tile(L, per_lane_bytes)
        Lp = pl.cdiv(L, TL) * TL
        if Lp != L:
            x2 = jnp.pad(x2, ((0, 0), (0, 0), (0, Lp - L)))
        out = pl.pallas_call(
            kernel,
            out_shape=jax.ShapeDtypeStruct((Hout, Lp), out_dtype),
            grid=(Lp // TL,),
            in_specs=[
                pl.BlockSpec((C, H, TL), lambda t: (0, 0, t)),
                w_spec,
            ],
            out_specs=pl.BlockSpec((Hout, TL), lambda t: (0, t)),
            compiler_params=pltpu.CompilerParams(
                dimension_semantics=("parallel",),
                vmem_limit_bytes=32 * 1024 * 1024),
        )(x2, w_flat)
        if Lp != L:
            out = out[:, :L]
        out = out.reshape(Hout, N, W).transpose(1, 0, 2)

    # Mirror torch.squeeze (drops ALL size-1 dims, e.g. N==1 or W==1).
    return jnp.squeeze(out)


def cmfp_reference(x, weight):
    """Pure-JAX reference using the conv definition (sanity check)."""
    C, M = weight.shape
    rhs = weight.reshape(1, C, M, 1).astype(jnp.float32)   # OIHW
    out = jax.lax.conv_general_dilated(
        x.astype(jnp.float32), rhs,
        window_strides=(1, 1), padding="VALID",
        dimension_numbers=("NCHW", "OIHW", "NCHW"))
    return jnp.squeeze(out).astype(x.dtype)


if __name__ == "__main__":
    key = jax.random.PRNGKey(0)

    def _run_case(case_key, N, C, H, W, M):
        kx, kw = jax.random.split(case_key)
        x = jax.random.normal(kx, (N, C, H, W), dtype=jnp.float32)
        weight = 0.1 * jax.random.normal(kw, (C, M), dtype=jnp.float32)
        out = jax.block_until_ready(cmfp_forward(x, weight))
        ref = cmfp_reference(x, weight)
        assert out.shape == ref.shape, (out.shape, ref.shape)
        assert jnp.allclose(out, ref, atol=1e-5, rtol=1e-5), (
            f"mismatch for case {(N, C, H, W, M)}")
        return out

    k0, k1, k2 = jax.random.split(key, 3)

    # Primary small case matching the module example: batch=2, channels=4,
    # 16x16 spatial, M_array=3 -> output (2, 14, 16).
    # (Path B: batch folded into lanes, single grid step.)
    out = _run_case(k0, 2, 4, 16, 16, 3)
    assert out.shape == (2, 14, 16), out.shape

    # Lane-dense W path (Path A), full-extent lane tile, grid=(N, 1).
    _run_case(k1, 2, 3, 12, 384, 4)

    # Lane-tiled + padded path (Path A): TW=1024, grid=(1, 2), N==1 squeeze.
    _run_case(k2, 1, 2, 16, 1280, 3)

    print("KERNEL_OK")
</pallas_src>

<mosaic_0001>
module attributes {stable_mosaic.version = 11 : i64} {
  func.func @_cmfp_kernel(%arg0: i32, %arg1: memref<4x16x32xf32, #tpu.memory_space<vmem>>, %arg2: memref<12xf32, #tpu.memory_space<smem>>, %arg3: memref<14x32xf32, #tpu.memory_space<vmem>>) attributes {dimension_semantics = [#tpu.dimension_semantics<parallel>], iteration_bounds = array<i64: 1>, scalar_prefetch = 0 : i64, scratch_operands = 0 : i64, tpu.core_type = #tpu.core_type<tc>, window_params = [{transform_indices = @transform_0, window_bounds = array<i64: 4, 16, 32>}, {transform_indices = @transform_1, window_bounds = array<i64: 12>}, {transform_indices = @transform_2, window_bounds = array<i64: 14, 32>}]} {
    %cst = arith.constant 0.000000e+00 : f32
    %0 = vector.broadcast %cst : f32 to vector<14x32xf32>
    %c0 = arith.constant 0 : index
    %c0_0 = arith.constant 0 : index
    %c0_1 = arith.constant 0 : index
    %1 = vector.load %arg1[%c0, %c0_0, %c0_1] : memref<4x16x32xf32, #tpu.memory_space<vmem>>, vector<1x14x32xf32>
    %2 = vector.shape_cast %1 : vector<1x14x32xf32> to vector<14x32xf32>
    %c0_2 = arith.constant 0 : index
    %3 = memref.load %arg2[%c0_2] : memref<12xf32, #tpu.memory_space<smem>>
    %4 = vector.broadcast %3 : f32 to vector<14x32xf32>
    %5 = arith.mulf %2, %4 : vector<14x32xf32>
    %6 = arith.addf %0, %5 : vector<14x32xf32>
    %c0_3 = arith.constant 0 : index
    %c1 = arith.constant 1 : index
    %c0_4 = arith.constant 0 : index
    %7 = vector.load %arg1[%c0_3, %c1, %c0_4] : memref<4x16x32xf32, #tpu.memory_space<vmem>>, vector<1x14x32xf32>
    %8 = vector.shape_cast %7 : vector<1x14x32xf32> to vector<14x32xf32>
    %c1_5 = arith.constant 1 : index
    %9 = memref.load %arg2[%c1_5] : memref<12xf32, #tpu.memory_space<smem>>
    %10 = vector.broadcast %9 : f32 to vector<14x32xf32>
    %11 = arith.mulf %8, %10 : vector<14x32xf32>
    %12 = arith.addf %6, %11 : vector<14x32xf32>
    %c0_6 = arith.constant 0 : index
    %c2 = arith.constant 2 : index
    %c0_7 = arith.constant 0 : index
    %13 = vector.load %arg1[%c0_6, %c2, %c0_7] : memref<4x16x32xf32, #tpu.memory_space<vmem>>, vector<1x14x32xf32>
    %14 = vector.shape_cast %13 : vector<1x14x32xf32> to vector<14x32xf32>
    %c2_8 = arith.constant 2 : index
    %15 = memref.load %arg2[%c2_8] : memref<12xf32, #tpu.memory_space<smem>>
    %16 = vector.broadcast %15 : f32 to vector<14x32xf32>
    %17 = arith.mulf %14, %16 : vector<14x32xf32>
    %18 = arith.addf %12, %17 : vector<14x32xf32>
    %c1_9 = arith.constant 1 : index
    %c0_10 = arith.constant 0 : index
    %c0_11 = arith.constant 0 : index
    %19 = vector.load %arg1[%c1_9, %c0_10, %c0_11] : memref<4x16x32xf32, #tpu.memory_space<vmem>>, vector<1x14x32xf32>
    %20 = vector.shape_cast %19 : vector<1x14x32xf32> to vector<14x32xf32>
    %c3 = arith.constant 3 : index
    %21 = memref.load %arg2[%c3] : memref<12xf32, #tpu.memory_space<smem>>
    %22 = vector.broadcast %21 : f32 to vector<14x32xf32>
    %23 = arith.mulf %20, %22 : vector<14x32xf32>
    %24 = arith.addf %18, %23 : vector<14x32xf32>
    %c1_12 = arith.constant 1 : index
    %c1_13 = arith.constant 1 : index
    %c0_14 = arith.constant 0 : index
    %25 = vector.load %arg1[%c1_12, %c1_13, %c0_14] : memref<4x16x32xf32, #tpu.memory_space<vmem>>, vector<1x14x32xf32>
    %26 = vector.shape_cast %25 : vector<1x14x32xf32> to vector<14x32xf32>
    %c4 = arith.constant 4 : index
    %27 = memref.load %arg2[%c4] : memref<12xf32, #tpu.memory_space<smem>>
    %28 = vector.broadcast %27 : f32 to vector<14x32xf32>
    %29 = arith.mulf %26, %28 : vector<14x32xf32>
    %30 = arith.addf %24, %29 : vector<14x32xf32>
    %c1_15 = arith.constant 1 : index
    %c2_16 = arith.constant 2 : index
    %c0_17 = arith.constant 0 : index
    %31 = vector.load %arg1[%c1_15, %c2_16, %c0_17] : memref<4x16x32xf32, #tpu.memory_space<vmem>>, vector<1x14x32xf32>
    %32 = vector.shape_cast %31 : vector<1x14x32xf32> to vector<14x32xf32>
    %c5 = arith.constant 5 : index
    %33 = memref.load %arg2[%c5] : memref<12xf32, #tpu.memory_space<smem>>
    %34 = vector.broadcast %33 : f32 to vector<14x32xf32>
    %35 = arith.mulf %32, %34 : vector<14x32xf32>
    %36 = arith.addf %30, %35 : vector<14x32xf32>
    %c2_18 = arith.constant 2 : index
    %c0_19 = arith.constant 0 : index
    %c0_20 = arith.constant 0 : index
    %37 = vector.load %arg1[%c2_18, %c0_19, %c0_20] : memref<4x16x32xf32, #tpu.memory_space<vmem>>, vector<1x14x32xf32>
    %38 = vector.shape_cast %37 : vector<1x14x32xf32> to vector<14x32xf32>
    %c6 = arith.constant 6 : index
    %39 = memref.load %arg2[%c6] : memref<12xf32, #tpu.memory_space<smem>>
    %40 = vector.broadcast %39 : f32 to vector<14x32xf32>
    %41 = arith.mulf %38, %40 : vector<14x32xf32>
    %42 = arith.addf %36, %41 : vector<14x32xf32>
    %c2_21 = arith.constant 2 : index
    %c1_22 = arith.constant 1 : index
    %c0_23 = arith.constant 0 : index
    %43 = vector.load %arg1[%c2_21, %c1_22, %c0_23] : memref<4x16x32xf32, #tpu.memory_space<vmem>>, vector<1x14x32xf32>
    %44 = vector.shape_cast %43 : vector<1x14x32xf32> to vector<14x32xf32>
    %c7 = arith.constant 7 : index
    %45 = memref.load %arg2[%c7] : memref<12xf32, #tpu.memory_space<smem>>
    %46 = vector.broadcast %45 : f32 to vector<14x32xf32>
    %47 = arith.mulf %44, %46 : vector<14x32xf32>
    %48 = arith.addf %42, %47 : vector<14x32xf32>
    %c2_24 = arith.constant 2 : index
    %c2_25 = arith.constant 2 : index
    %c0_26 = arith.constant 0 : index
    %49 = vector.load %arg1[%c2_24, %c2_25, %c0_26] : memref<4x16x32xf32, #tpu.memory_space<vmem>>, vector<1x14x32xf32>
    %50 = vector.shape_cast %49 : vector<1x14x32xf32> to vector<14x32xf32>
    %c8 = arith.constant 8 : index
    %51 = memref.load %arg2[%c8] : memref<12xf32, #tpu.memory_space<smem>>
    %52 = vector.broadcast %51 : f32 to vector<14x32xf32>
    %53 = arith.mulf %50, %52 : vector<14x32xf32>
    %54 = arith.addf %48, %53 : vector<14x32xf32>
    %c3_27 = arith.constant 3 : index
    %c0_28 = arith.constant 0 : index
    %c0_29 = arith.constant 0 : index
    %55 = vector.load %arg1[%c3_27, %c0_28, %c0_29] : memref<4x16x32xf32, #tpu.memory_space<vmem>>, vector<1x14x32xf32>
    %56 = vector.shape_cast %55 : vector<1x14x32xf32> to vector<14x32xf32>
    %c9 = arith.constant 9 : index
    %57 = memref.load %arg2[%c9] : memref<12xf32, #tpu.memory_space<smem>>
    %58 = vector.broadcast %57 : f32 to vector<14x32xf32>
    %59 = arith.mulf %56, %58 : vector<14x32xf32>
    %60 = arith.addf %54, %59 : vector<14x32xf32>
    %c3_30 = arith.constant 3 : index
    %c1_31 = arith.constant 1 : index
    %c0_32 = arith.constant 0 : index
    %61 = vector.load %arg1[%c3_30, %c1_31, %c0_32] : memref<4x16x32xf32, #tpu.memory_space<vmem>>, vector<1x14x32xf32>
    %62 = vector.shape_cast %61 : vector<1x14x32xf32> to vector<14x32xf32>
    %c10 = arith.constant 10 : index
    %63 = memref.load %arg2[%c10] : memref<12xf32, #tpu.memory_space<smem>>
    %64 = vector.broadcast %63 : f32 to vector<14x32xf32>
    %65 = arith.mulf %62, %64 : vector<14x32xf32>
    %66 = arith.addf %60, %65 : vector<14x32xf32>
    %c3_33 = arith.constant 3 : index
    %c2_34 = arith.constant 2 : index
    %c0_35 = arith.constant 0 : index
    %67 = vector.load %arg1[%c3_33, %c2_34, %c0_35] : memref<4x16x32xf32, #tpu.memory_space<vmem>>, vector<1x14x32xf32>
    %68 = vector.shape_cast %67 : vector<1x14x32xf32> to vector<14x32xf32>
    %c11 = arith.constant 11 : index
    %69 = memref.load %arg2[%c11] : memref<12xf32, #tpu.memory_space<smem>>
    %70 = vector.broadcast %69 : f32 to vector<14x32xf32>
    %71 = arith.mulf %68, %70 : vector<14x32xf32>
    %72 = arith.addf %66, %71 : vector<14x32xf32>
    %c0_36 = arith.constant 0 : index
    %c0_37 = arith.constant 0 : index
    %73 = vector.load %arg3[%c0_36, %c0_37] : memref<14x32xf32, #tpu.memory_space<vmem>>, vector<14x32xf32>
    tpu.vector_store %arg3[%c0_36, %c0_37], %72 {strides = array<i32>} : memref<14x32xf32, #tpu.memory_space<vmem>>, vector<14x32xf32>,
    return
  }
  func.func @transform_0(%arg0: i32) -> (i32, i32, i32) {
    %c0_i32 = arith.constant 0 : i32
    %c0_i32_0 = arith.constant 0 : i32
    %c0_i32_1 = arith.constant 0 : i32
    return %c0_i32, %c0_i32_0, %arg0 : i32, i32, i32
  }
  func.func @transform_1(%arg0: i32) -> i32 {
    %c0_i32 = arith.constant 0 : i32
    %c0_i32_0 = arith.constant 0 : i32
    return %c0_i32 : i32
  }
  func.func @transform_2(%arg0: i32) -> (i32, i32) {
    %c0_i32 = arith.constant 0 : i32
    %c0_i32_0 = arith.constant 0 : i32
    return %c0_i32, %arg0 : i32, i32
  }
}

</mosaic_0001>

<bundles_post_ra>
// kernel: tpu_custom_call.1
= control target key start
LH: loop header
LB: loop body
LE: loop exit
PB: predicated region body
PF: predicated region fallthrough
CT: control target
= control target key end

     0   :  { %7 = vsyncpa [#allocation3], 0  ;;  %s327_s0 = inlined_call_operand.hbm [shape: f32[4,16,32], index: 0, kind: input, shape index: {}]   ;;  %s328_s1 = inlined_call_operand.vmem [shape: f32[12], index: 1, kind: input, shape index: {}]   ;;  %s329_s2 = inlined_call_operand.hbm [shape: f32[14,32], index: 2, kind: output, shape index: {}]  }
   0x1   :  { %8 = vsyncpa [#allocation5], 0 }
   0x2   :  { %9 = vsyncpa [#allocation4], 0  ;;  %s238_s9 = smov [#allocation2]   ;;  %s28_s13 = sshll.u32 %s328_s1, 4  ;;  %s29_s13 = int_to_ptr.vmem [resolvable:$true] %s28_s13 }
   0x3   :  { %s15_s10 = sshll.u32 %s238_s9, 4  ;;  %s176_s16 = scalar_lea.hbm %s327_s0, 1024  ;;  %s16_s10 = int_to_ptr.vmem [resolvable:$true] %s15_s10 }
   0x4   :  { %p177_p0 = scmp.ne.s32.totalorder %s327_s0, %s176_s16  ;;  %p180_p1 = scmp.lt.u32.totalorder %s176_s16, %s327_s0 }
   0x6   :  { %p182_p2 = pnand %p180_p1, %p177_p0 }
   0x8   :  { %185 = shalt.err (!%p182_p2)
}
   0x9   :  { %s186_s21 = scalar_lea.vmem %s16_s10, 1024  ;;  %p191_p4 = scmp.lt.s32.totalorder %s16_s10, %s16_s10 }
   0xa   :  { %p187_p3 = scmp.ne.s32.totalorder %s16_s10, %s186_s21  ;;  %p192_p5 = scmp.lt.s32.totalorder %s186_s21, %s186_s21 }
   0xc   :  { %p193_p6 = por %p192_p5, %p191_p4 }
   0xe   :  { %p194_p7 = pnand %p193_p6, %p187_p3 }
  0x10   :  { %197 = shalt.err (!%p194_p7)
}
  0x11   :  { %s239_s1 = smov 128   ;;  %s240_s22 = smov 8  }
  0x12   :  { %21 = dma.hbm_to_vmem [thread:$0]  %s327_s0, 1024, %s16_s10, [#allocation3], %s239_s1, %s239_s1, %s240_s22  }
  0x13   :  { %s198_s25 = scalar_lea.vmem %s29_s13, 16  ;;  %p203_p9 = scmp.lt.s32.totalorder %s29_s13, %s29_s13 }
  0x14   :  { %p199_p8 = scmp.ne.s32.totalorder %s29_s13, %s198_s25  ;;  %p204_p10 = scmp.lt.s32.totalorder %s198_s25, %s198_s25 }
  0x16   :  { %p205_p11 = por %p204_p10, %p203_p9 }
  0x18   :  { %p206_p12 = pnand %p205_p11, %p199_p8 }
  0x1a   :  { %209 = shalt.err (!%p206_p12)
}
  0x1b   :  { %s241_s26 = smov [#allocation6]  }
  0x1c   :  { %31 = dma.vmem_to_smem %s29_s13, 16, %s241_s26, [#allocation5]  }
  0x1d   :  { %232 = dma.done.wait [#allocation3], 1024  }
  0x1e   :  { %233 = vsyncadd [#allocation3], 4294966272 }
  0x1f   :  { %234 = dma.done.wait [#allocation5], 16  }
  0x20   :  { %235 = vsyncadd [#allocation5], 4294967280 }
  0x21   :  { %38 = sfence }
  0x22   :  { %s276_s27 = sld [smem:[#allocation6]]  ;;  %s278_s28 = sld [smem:[#allocation6 + $0x1]]  ;;  %v39_v0 = vld [vmem:[#allocation2] sm:$0xff]  ;;  %v64_v5 = vld [vmem:[#allocation2 + $0x10] sm:$0xff]  ;;  %v40_v15 = vld [vmem:[#allocation2 + $0x8] sm:$0x3f] }
  0x23   :  { %s280_s0 = sld [smem:[#allocation6 + $0x2]]  ;;  %s282_s29 = sld [smem:[#allocation6 + $0x3]]  ;;  %v47_v1 = vld [vmem:[#allocation2 + $0x1] sm:$0xff]  ;;  %v72_v11 = vld [vmem:[#allocation2 + $0x11] sm:$0xff]  ;;  %v48_v16 = vld [vmem:[#allocation2 + $0x9] sm:$0x3f] }
  0x24   :  { %s284_s30 = sld [smem:[#allocation6 + $0x4]]  ;;  %s286_s3 = sld [smem:[#allocation6 + $0x5]]  ;;  %v55_v2 = vld [vmem:[#allocation2 + $0x2] sm:$0xff]  ;;  %v80_v17 = vld [vmem:[#allocation2 + $0x12] sm:$0xff]  ;;  %v56_v19 = vld [vmem:[#allocation2 + $0xa] sm:$0x3f] }
  0x25   :  { %s288_s4 = sld [smem:[#allocation6 + $0x6]]  ;;  %s292_s5 = sld [smem:[#allocation6 + $0x7]]  ;;  %v65_v22 = vld [vmem:[#allocation2 + $0x18] sm:$0x3f]  ;;  %v89_v23 = vld [vmem:[#allocation2 + $0x20] sm:$0xff]  ;;  %v114_v45 = vld [vmem:[#allocation2 + $0x30] sm:$0xff] }
  0x26   :  { %s297_s6 = sld [smem:[#allocation6 + $0x8]]  ;;  %s300_s7 = sld [smem:[#allocation6 + $0x9]]  ;;  %v73_v30 = vld [vmem:[#allocation2 + $0x19] sm:$0x3f]  ;;  %v97_v31 = vld [vmem:[#allocation2 + $0x21] sm:$0xff]  ;;  %v122_v52 = vld [vmem:[#allocation2 + $0x31] sm:$0xff] }
  0x27   :  { %s303_s8 = sld [smem:[#allocation6 + $0xa]]  ;;  %s306_s9 = sld [smem:[#allocation6 + $0xb]]  ;;  %v81_v37 = vld [vmem:[#allocation2 + $0x1a] sm:$0x3f]  ;;  %v105_v38 = vld [vmem:[#allocation2 + $0x22] sm:$0xff]  ;;  %v130_v59 = vld [vmem:[#allocation2 + $0x32] sm:$0xff] }
  0x28   :  { %v42_v3 = vstv %s276_s27  ;;  %v50_v4 = vstv %s278_s28  ;;  %v90_v44 = vld [vmem:[#allocation2 + $0x28] sm:$0x3f]  ;;  %vm138_vm0 = vcmask 261120   ;;  %s242_s10 = smov [#allocation7]   ;;  %vm140_vm1 = vcmask 259072  }
  0x29   :  { %v43_v6 = vmul.f32 %v42_v3, %v39_v0  ;;  %v51_v7 = vmul.f32 %v50_v4, %v47_v1  ;;  %v58_v8 = vstv %s280_s0  ;;  %v67_v9 = vstv %s282_s29  ;;  %v98_v51 = vld [vmem:[#allocation2 + $0x29] sm:$0x3f]  ;;  %v115_v1 = vld [vmem:[#allocation2 + $0x38] sm:$0x3f]  ;;  %s147_s11 = sshll.u32 %s242_s10, 4  ;;  %s148_s11 = int_to_ptr.vmem [resolvable:$true] %s147_s11 }
  0x2a   :  { %v59_v10 = vmul.f32 %v58_v8, %v55_v2  ;;  %v75_v12 = vstv %s284_s30  ;;  %v68_v14 = vmul.f32 %v67_v9, %v64_v5  ;;  %v83_v18 = vstv %s286_s3  ;;  %v106_v58 = vld [vmem:[#allocation2 + $0x2a] sm:$0x3f]  ;;  %s210_s12 = scalar_lea.vmem %s148_s11, 256  ;;  %p215_p0 = scmp.lt.s32.totalorder %s148_s11, %s148_s11 }
  0x2b   :  { %v53_v13 = vadd.f32 %v51_v7, %v43_v6  ;;  %v76_v21 = vmul.f32 %v75_v12, %v72_v11  ;;  %v92_v24 = vstv %s288_s4  ;;  %v44_v25 = vmul.f32 %v42_v3, %v40_v15  ;;  %v123_v6 = vld [vmem:[#allocation2 + $0x39] sm:$0x3f]  ;;  %p211_p13 = scmp.ne.s32.totalorder %s148_s11, %s210_s12  ;;  %p216_p1 = scmp.lt.s32.totalorder %s210_s12, %s210_s12 }
  0x2c   :  { %v52_v26 = vmul.f32 %v50_v4, %v48_v16  ;;  %v84_v28 = vmul.f32 %v83_v18, %v80_v17  ;;  %v60_v29 = vmul.f32 %v58_v8, %v56_v19  ;;  %v100_v32 = vstv %s292_s5 }
  0x2d   :  { %v61_v20 = vadd.f32 %v59_v10, %v53_v13  ;;  %v69_v34 = vmul.f32 %v67_v9, %v65_v22  ;;  %v93_v36 = vmul.f32 %v92_v24, %v89_v23  ;;  %v108_v39 = vstv %s297_s6  ;;  %v131_v10 = vld [vmem:[#allocation2 + $0x3a] sm:$0x3f]  ;;  %p217_p2 = por %p216_p1, %p215_p0 }
  0x2e   :  { %v54_v33 = vadd.f32 %v52_v26, %v44_v25  ;;  %v77_v41 = vmul.f32 %v75_v12, %v73_v30  ;;  %v101_v43 = vmul.f32 %v100_v32, %v97_v31  ;;  %v117_v46 = vstv %s300_s7 }
  0x2f   :  { %v70_v27 = vadd.f32 %v68_v14, %v61_v20  ;;  %v85_v48 = vmul.f32 %v83_v18, %v81_v37  ;;  %v109_v50 = vmul.f32 %v108_v39, %v105_v38  ;;  %v125_v53 = vstv %s303_s8  ;;  %p218_p3 = pnand %p217_p2, %p211_p13 }
  0x30   :  { %v62_v40 = vadd.f32 %v60_v29, %v54_v33  ;;  %v94_v55 = vmul.f32 %v92_v24, %v90_v44  ;;  %v118_v57 = vmul.f32 %v117_v46, %v114_v45  ;;  %v133_v60 = vstv %s306_s9 }
  0x31   :  { %v78_v35 = vadd.f32 %v76_v21, %v70_v27  ;;  %v102_v62 = vmul.f32 %v100_v32, %v98_v51  ;;  %v126_v0 = vmul.f32 %v125_v53, %v122_v52  ;;  %v110_v3 = vmul.f32 %v108_v39, %v106_v58 }
  0x32   :  { %v71_v47 = vadd.f32 %v69_v34, %v62_v40  ;;  %v134_v5 = vmul.f32 %v133_v60, %v130_v59  ;;  %v119_v8 = vmul.f32 %v117_v46, %v115_v1  ;;  %v127_v12 = vmul.f32 %v125_v53, %v123_v6 }
  0x33   :  { %v86_v42 = vadd.f32 %v84_v28, %v78_v35  ;;  %v135_v15 = vmul.f32 %v133_v60, %v131_v10 }
  0x34   :  { %v79_v54 = vadd.f32 %v77_v41, %v71_v47 }
  0x35   :  { %v95_v49 = vadd.f32 %v93_v36, %v86_v42 }
  0x36   :  { %v87_v61 = vadd.f32 %v85_v48, %v79_v54 }
  0x37   :  { %v103_v56 = vadd.f32 %v101_v43, %v95_v49 }
  0x38   :  { %v96_v2 = vadd.f32 %v94_v55, %v87_v61 }
  0x39   :  { %v111_v63 = vadd.f32 %v109_v50, %v103_v56 }
  0x3a   :  { %v104_v7 = vadd.f32 %v102_v62, %v96_v2 }
  0x3b   :  { %v120_v4 = vadd.f32 %v118_v57, %v111_v63 }
  0x3c   :  { %v112_v11 = vadd.f32 %v110_v3, %v104_v7 }
  0x3d   :  { %v128_v9 = vadd.f32 %v126_v0, %v120_v4 }
  0x3e   :  { %v121_v14 = vadd.f32 %v119_v8, %v112_v11 }
  0x3f   :  { %v136_v13 = vadd.f32 %v134_v5, %v128_v9 }
  0x40   :  { %v129_v16 = vadd.f32 %v127_v12, %v121_v14 }
  0x41   :  { %139 = vst.msk [vmem:[#allocation7] sm:$0xff] %vm138_vm0, %v136_v13 }
  0x42   :  { %v137_v17 = vadd.f32 %v135_v15, %v129_v16 }
  0x44   :  { %141 = vst.msk [vmem:[#allocation7 + $0x8] sm:$0x3f] %vm140_vm1, %v137_v17 }
  0x45   :  { %221 = shalt.err (!%p218_p3)
}
  0x46   :  { %s222_s15 = scalar_lea.hbm %s329_s2, 256 }
  0x47   :  { %p223_p4 = scmp.ne.s32.totalorder %s329_s2, %s222_s15  ;;  %p226_p5 = scmp.lt.u32.totalorder %s222_s15, %s329_s2 }
  0x49   :  { %p228_p6 = pnand %p226_p5, %p223_p4 }
  0x4b   :  { %231 = shalt.err (!%p228_p6)
}
  0x4c   :  { %153 = dma.vmem_to_hbm [thread:$0]  %s148_s11, 256, %s329_s2, [#allocation4], %s239_s1, %s239_s1, %s240_s22  }
  0x4d   :  { %236 = dma.done.wait [#allocation4], 256  }
  0x4e   :  { %237 = vsyncadd [#allocation4], 4294967040 }
  0x4f   :  { %157 = vsyncpa [#allocation3], 1 }
  0x50   :  { %158 = vsyncpa [#allocation4], 1 }
  0x51   :  { %159 = vsyncpa [#allocation5], 1 }

</bundles_post_ra>
